<compile_context>
chip_gen: v6e
topology: v6e:2x2x1
jax: 0.10.0
libtpu: 0.0.40
codegen_flags: <defaults>
</compile_context>

<pallas_src>
import functools

import numpy as np
import jax
import jax.numpy as jnp
from jax.experimental import pallas as pl
from jax.experimental.pallas import tpu as pltpu


def _softmoe_kernel(x_ref, phi_ref, mask_ref, scale_ref, w_ref, b_ref, y_ref,
                    c_scr, xs_scr, ys_scr, *, slot_pad, n_experts, tail,
                    normalize, mxu_dtype):
    """Grid is (batch, expert). Per batch element:
         n == 0   : normalize, logits, both softmaxes, dispatch xs, zero tail
         every n  : ys[expert-n rows] = xs[expert-n rows] @ W_n + b_n
         n == N-1 : y = c @ ys  (single lane-dense combine matmul)
    """
    n = pl.program_id(1)
    eps = 1e-12
    mx = lambda a: a.astype(mxu_dtype)          # MXU feed dtype (bf16 in prod)

    @pl.when(n == 0)
    def _dispatch():
        x = x_ref[0].astype(jnp.float32)        # [M, D]
        phi = phi_ref[...].astype(jnp.float32)  # [D, S_pad]
        if normalize:
            xnorm = jnp.sqrt(jnp.sum(x * x, axis=-1, keepdims=True))
            x = x / jnp.maximum(xnorm, eps)
            pnorm = jnp.sqrt(jnp.sum(phi * phi, axis=0, keepdims=True))
            phi = scale_ref[0] * (phi / jnp.maximum(pnorm, eps))

        # logits over the lane-padded slot axis (padded phi columns are zero).
        logits = jnp.dot(mx(x), mx(phi),
                         preferred_element_type=jnp.float32)       # [M, S_pad]

        # d: softmax over tokens (dim=1 of [B, M, N, P]). Padded columns give
        # harmless finite values; their contribution is killed by c == 0.
        d_max = jnp.max(logits, axis=0, keepdims=True)
        d_exp = jnp.exp(logits - d_max)
        d = d_exp * pl.reciprocal(jnp.sum(d_exp, axis=0, keepdims=True),
                                  approx=True)

        # c: joint softmax over (experts, slots). Additive -1e30 mask drives
        # every padded slot column to exactly zero.
        logits_c = logits + mask_ref[...]
        c_max = jnp.max(logits_c, axis=1, keepdims=True)
        c_exp = jnp.exp(logits_c - c_max)
        c_scr[...] = c_exp * pl.reciprocal(
            jnp.sum(c_exp, axis=1, keepdims=True), approx=True)

        # xs[s, :] = sum_m d[m, s] * x[m, :]. Transpose the SMALL operand (d);
        # x is fed to the MXU untransposed.
        xs_scr[...] = jnp.dot(mx(d.T), mx(x),
                              preferred_element_type=jnp.float32)  # [S_pad, D]

        # Only rows past the last expert block are never written by an expert
        # step; zero just that tail so the combine reads finite data only.
        if tail > 0:
            ys_scr[pl.ds(n_experts * slot_pad, tail), :] = jnp.zeros(
                (tail, ys_scr.shape[1]), jnp.float32)

    # ---- expert n (one per grid step; weights streamed through VMEM) --------
    lo = pl.multiple_of(n * slot_pad, slot_pad)          # 8-aligned sublane offset
    xs_n = xs_scr[pl.ds(lo, slot_pad), :]                # [slot_pad, D]
    ys_n = jnp.dot(mx(xs_n), mx(w_ref[0]),
                   preferred_element_type=jnp.float32)   # [slot_pad, D]
    ys_scr[pl.ds(lo, slot_pad), :] = ys_n + b_ref[0].astype(jnp.float32)

    # ---- single combine matmul at the last expert step ----------------------
    @pl.when(n == pl.num_programs(1) - 1)
    def _combine():
        y = jnp.dot(mx(c_scr[...]), mx(ys_scr[...]),
                    preferred_element_type=jnp.float32)  # [M, D]
        y_ref[0] = y.astype(y_ref.dtype)


def _round_up(v, m):
    return -(-v // m) * m


def _vmem_limit_bytes(M, D, S_pad, itemsize):
    # Double-buffered pipeline blocks (x, y, phi, mask, W_n, b_n) + scratch.
    blocks = (2 * M * D + D * S_pad + D * D + D) * itemsize + S_pad * 4
    scratch = (M * S_pad + 2 * S_pad * D) * 4
    need = 2 * blocks + scratch
    # Explicit limit with headroom; for production shapes keep this under
    # ~48 MiB so the kernel also fits v7x's 64 MiB per-core VMEM.
    return int(max(2 * need, 16 * 2 ** 20))


def soft_moe_forward(x, phi, scale, w, b, *, normalize=True, mxu_dtype=None):
    """x: [B, M, D], phi: [D, N, P], scale: [1], w: [N, D, D] (in,out), b: [N, 1, D]."""
    B, M, D = x.shape
    Dp, N, P = phi.shape
    assert Dp == D and w.shape == (N, D, D) and b.shape == (N, 1, D)
    out_dtype = x.dtype
    if mxu_dtype is None:
        mxu_dtype = x.dtype
    mxu_dtype = np.dtype(mxu_dtype)

    # Per-expert slot block padded to a sublane multiple (8) so every expert's
    # rows in the [S_pad, D] dispatch / expert-output buffers are 8-aligned;
    # total slot axis padded to a lane multiple (128) for lane-dense vregs.
    P_pad = _round_up(P, 8)
    S_pad = _round_up(N * P_pad, 128)
    tail = S_pad - N * P_pad

    # phi laid out as [D, S_pad]: expert n's real slots in columns
    # [n*P_pad, n*P_pad + P); every padded column is zero.
    phi_pad = jnp.zeros((D, N, P_pad), phi.dtype).at[:, :, :P].set(phi)
    phi_pad = jnp.zeros((D, S_pad), phi.dtype).at[:, : N * P_pad].set(
        phi_pad.reshape(D, N * P_pad))

    # Additive mask for the combine softmax: 0 on real slots, -1e30 on padding.
    col = jnp.arange(S_pad)
    valid = (col < N * P_pad) & ((col % P_pad) < P)
    mask = jnp.where(valid, 0.0, -1e30).astype(jnp.float32).reshape(1, S_pad)

    # Feed the MXU in `mxu_dtype` (bf16 recommended in production); the
    # in-kernel normalization / softmax math and accumulators stay f32.
    x_c, phi_c = x.astype(mxu_dtype), phi_pad.astype(mxu_dtype)
    w_c, b_c = w.astype(mxu_dtype), b.astype(mxu_dtype)
    scale_c = scale.astype(jnp.float32)

    kernel = functools.partial(_softmoe_kernel, slot_pad=P_pad, n_experts=N,
                               tail=tail, normalize=normalize,
                               mxu_dtype=mxu_dtype)

    # TODO(synk): for seq_len < 256 on v6e/v7x, pack several batch rows into a
    # (TB, M, D) tile and run the expert matmuls on a [TB*P_pad, D] view to
    # fill the 256-wide MXU (per-batch softmaxes done inside the tile).
    return pl.pallas_call(
        kernel,
        out_shape=jax.ShapeDtypeStruct((B, M, D), out_dtype),
        grid_spec=pltpu.PrefetchScalarGridSpec(
            num_scalar_prefetch=0,
            grid=(B, N),                                   # experts streamed on axis 1
            in_specs=[
                pl.BlockSpec((1, M, D), lambda bi, ni: (bi, 0, 0)),    # x
                pl.BlockSpec((D, S_pad), lambda bi, ni: (0, 0)),       # phi (padded)
                pl.BlockSpec((1, S_pad), lambda bi, ni: (0, 0)),       # slot mask
                pl.BlockSpec(memory_space=pltpu.SMEM),                 # scale scalar
                pl.BlockSpec((1, D, D), lambda bi, ni: (ni, 0, 0)),    # W_n (streamed)
                pl.BlockSpec((1, 1, D), lambda bi, ni: (ni, 0, 0)),    # b_n (streamed)
            ],
            out_specs=pl.BlockSpec((1, M, D), lambda bi, ni: (bi, 0, 0)),
            scratch_shapes=[
                pltpu.VMEM((M, S_pad), jnp.float32),    # c   (combine weights)
                pltpu.VMEM((S_pad, D), jnp.float32),    # xs  (dispatched slots)
                pltpu.VMEM((S_pad, D), jnp.float32),    # ys  (expert outputs)
            ],
        ),
        compiler_params=pltpu.CompilerParams(
            dimension_semantics=("parallel", "arbitrary"),  # batch sharded on megacore
            vmem_limit_bytes=_vmem_limit_bytes(M, D, S_pad, mxu_dtype.itemsize),
        ),
    )(x_c, phi_c, mask, scale_c, w_c, b_c)


def soft_moe_ref(x, phi, scale, w, b):
    """Plain-JAX reference matching the PyTorch forward exactly."""
    eps = 1e-12
    xn = x / jnp.maximum(jnp.linalg.norm(x, axis=2, keepdims=True), eps)
    phin = scale[0] * phi / jnp.maximum(
        jnp.linalg.norm(phi, axis=0, keepdims=True), eps)
    logits = jnp.einsum('bmd,dnp->bmnp', xn, phin)
    d = jax.nn.softmax(logits, axis=1)
    B, M, N, P = logits.shape
    c = jax.nn.softmax(logits.reshape(B, M, N * P), axis=-1).reshape(B, M, N, P)
    xs = jnp.einsum('bmd,bmnp->bnpd', xn, d)
    ys = jnp.einsum('bnpd,nde->bnpe', xs, w) + b[None, :, :, :]
    y = jnp.einsum('bnpd,bmnp->bmd', ys, c)
    return y


if __name__ == "__main__":
    B, M, D = 2, 8, 32          # batch, seq_len, dim
    N, P = 4, 2                 # num_experts, slots_per_expert

    key = jax.random.PRNGKey(0)
    kx, kphi, kw, kb = jax.random.split(key, 4)

    x = jax.random.normal(kx, (B, M, D), dtype=jnp.float32)
    # nn.init.normal_(phi, mean=0, std=1/sqrt(dim))
    phi = jax.random.normal(kphi, (D, N, P), dtype=jnp.float32) / (D ** 0.5)
    scale = jnp.ones((1,), dtype=jnp.float32)
    # Experts: nn.Linear(D, D); synthetic init, stored as [N, D_in, D_out].
    w = jax.random.normal(kw, (N, D, D), dtype=jnp.float32) / (D ** 0.5)
    b = jax.random.normal(kb, (N, 1, D), dtype=jnp.float32) * 0.01

    y_ref = soft_moe_ref(x, phi, scale, w, b)

    # f32 MXU path (tight correctness check; approx-reciprocal softmax denoms).
    y = soft_moe_forward(x, phi, scale, w, b, normalize=True)
    jax.block_until_ready(y)
    assert y.shape == (B, M, D)
    assert jnp.allclose(y, y_ref, atol=2e-3, rtol=2e-3), "f32 mismatch vs reference"

    # bf16-fed MXU path (production mode: halves W DMA traffic and VMEM).
    y16 = soft_moe_forward(x, phi, scale, w, b, normalize=True,
                           mxu_dtype=jnp.bfloat16)
    jax.block_until_ready(y16)
    assert y16.shape == (B, M, D)
    assert jnp.allclose(y16, y_ref, atol=5e-2, rtol=5e-2), "bf16 mismatch vs reference"

    print("KERNEL_OK")
</pallas_src>

<mosaic_0001>
module attributes {stable_mosaic.version = 11 : i64} {
  func.func @_softmoe_kernel(%arg0: i32, %arg1: i32, %arg2: memref<1x8x32xf32, #tpu.memory_space<vmem>>, %arg3: memref<32x128xf32, #tpu.memory_space<vmem>>, %arg4: memref<1x128xf32, #tpu.memory_space<vmem>>, %arg5: memref<1xf32, #tpu.memory_space<smem>>, %arg6: memref<1x32x32xf32, #tpu.memory_space<vmem>>, %arg7: memref<1x1x32xf32, #tpu.memory_space<vmem>>, %arg8: memref<1x8x32xf32, #tpu.memory_space<vmem>>, %arg9: memref<8x128xf32, #tpu.memory_space<vmem>>, %arg10: memref<128x32xf32, #tpu.memory_space<vmem>>, %arg11: memref<128x32xf32, #tpu.memory_space<vmem>>) attributes {dimension_semantics = [#tpu.dimension_semantics<parallel>, #tpu.dimension_semantics<arbitrary>], iteration_bounds = array<i64: 2, 4>, scalar_prefetch = 0 : i64, scratch_operands = 3 : i64, tpu.core_type = #tpu.core_type<tc>, window_params = [{transform_indices = @transform_0, window_bounds = array<i64: 1, 8, 32>}, {pipeline_mode = #tpu.pipeline_mode<synchronous>, transform_indices = @transform_1, window_bounds = array<i64: 32, 128>}, {pipeline_mode = #tpu.pipeline_mode<synchronous>, transform_indices = @transform_2, window_bounds = array<i64: 1, 128>}, {transform_indices = @transform_3, window_bounds = array<i64: 1>}, {transform_indices = @transform_4, window_bounds = array<i64: 1, 32, 32>}, {transform_indices = @transform_5, window_bounds = array<i64: 1, 1, 32>}, {transform_indices = @transform_6, window_bounds = array<i64: 1, 8, 32>}]} {
    %c0_i32 = arith.constant 0 : i32
    %0 = arith.cmpi eq, %arg1, %c0_i32 : i32
    %1 = arith.extui %0 : i1 to i32
    %c0_i32_0 = arith.constant 0 : i32
    %2 = arith.cmpi ne, %1, %c0_i32_0 : i32
    scf.if %2 {
      %c0_9 = arith.constant 0 : index
      %c0_10 = arith.constant 0 : index
      %c0_11 = arith.constant 0 : index
      %19 = vector.load %arg2[%c0_9, %c0_10, %c0_11] : memref<1x8x32xf32, #tpu.memory_space<vmem>>, vector<1x8x32xf32>
      %20 = vector.shape_cast %19 : vector<1x8x32xf32> to vector<8x32xf32>
      %c0_12 = arith.constant 0 : index
      %c0_13 = arith.constant 0 : index
      %21 = vector.load %arg3[%c0_12, %c0_13] : memref<32x128xf32, #tpu.memory_space<vmem>>, vector<32x128xf32>
      %22 = arith.mulf %20, %20 : vector<8x32xf32>
      %cst_14 = arith.constant dense<0.000000e+00> : vector<8xf32>
      %23 = vector.multi_reduction <add>, %22, %cst_14 [1] : vector<8x32xf32> to vector<8xf32>
      %24 = vector.shape_cast %23 : vector<8xf32> to vector<8x1xf32>
      %25 = math.sqrt %24 : vector<8x1xf32>
      %cst_15 = arith.constant 9.99999996E-13 : f32
      %26 = vector.broadcast %cst_15 : f32 to vector<8x1xf32>
      %27 = arith.maximumf %25, %26 : vector<8x1xf32>
      %28 = vector.broadcast %27 : vector<8x1xf32> to vector<8x32xf32>
      %29 = arith.divf %20, %28 : vector<8x32xf32>
      %30 = arith.mulf %21, %21 : vector<32x128xf32>
      %cst_16 = arith.constant dense<0.000000e+00> : vector<128xf32>
      %31 = vector.multi_reduction <add>, %30, %cst_16 [0] : vector<32x128xf32> to vector<128xf32>
      %32 = vector.shape_cast %31 : vector<128xf32> to vector<1x128xf32>
      %33 = math.sqrt %32 : vector<1x128xf32>
      %c0_17 = arith.constant 0 : index
      %34 = memref.load %arg5[%c0_17] : memref<1xf32, #tpu.memory_space<smem>>
      %cst_18 = arith.constant 9.99999996E-13 : f32
      %35 = vector.broadcast %cst_18 : f32 to vector<1x128xf32>
      %36 = arith.maximumf %33, %35 : vector<1x128xf32>
      %37 = vector.broadcast %36 : vector<1x128xf32> to vector<32x128xf32>
      %38 = arith.divf %21, %37 : vector<32x128xf32>
      %39 = vector.broadcast %34 : f32 to vector<32x128xf32>
      %40 = arith.mulf %39, %38 : vector<32x128xf32>
      %cst_19 = arith.constant dense<0.000000e+00> : vector<8x128xf32>
      %41 = tpu.matmul %29, %40, %cst_19 {dimension_numbers = #tpu.dot_dimension_numbers<[1], [0], [0], [1], [0, 0, 1, 1], [], []>} : vector<8x32xf32>, vector<32x128xf32>, vector<8x128xf32> -> vector<8x128xf32>
      %cst_20 = arith.constant dense<0xFF800000> : vector<128xf32>
      %42 = vector.multi_reduction <maximumf>, %41, %cst_20 [0] : vector<8x128xf32> to vector<128xf32>
      %43 = vector.shape_cast %42 : vector<128xf32> to vector<1x128xf32>
      %44 = vector.broadcast %43 : vector<1x128xf32> to vector<8x128xf32>
      %45 = arith.subf %41, %44 : vector<8x128xf32>
      %46 = math.exp %45 : vector<8x128xf32>
      %cst_21 = arith.constant dense<0.000000e+00> : vector<128xf32>
      %47 = vector.multi_reduction <add>, %46, %cst_21 [0] : vector<8x128xf32> to vector<128xf32>
      %48 = vector.shape_cast %47 : vector<128xf32> to vector<1x128xf32>
      %49 = tpu.reciprocal %48 {approx = true} : vector<1x128xf32> -> vector<1x128xf32>
      %50 = vector.broadcast %49 : vector<1x128xf32> to vector<8x128xf32>
      %51 = arith.mulf %46, %50 : vector<8x128xf32>
      %c0_22 = arith.constant 0 : index
      %c0_23 = arith.constant 0 : index
      %52 = vector.load %arg4[%c0_22, %c0_23] : memref<1x128xf32, #tpu.memory_space<vmem>>, vector<1x128xf32>
      %53 = vector.broadcast %52 : vector<1x128xf32> to vector<8x128xf32>
      %54 = arith.addf %41, %53 : vector<8x128xf32>
      %cst_24 = arith.constant dense<0xFF800000> : vector<8xf32>
      %55 = vector.multi_reduction <maximumf>, %54, %cst_24 [1] : vector<8x128xf32> to vector<8xf32>
      %56 = vector.shape_cast %55 : vector<8xf32> to vector<8x1xf32>
      %57 = vector.broadcast %56 : vector<8x1xf32> to vector<8x128xf32>
      %58 = arith.subf %54, %57 : vector<8x128xf32>
      %59 = math.exp %58 : vector<8x128xf32>
      %cst_25 = arith.constant dense<0.000000e+00> : vector<8xf32>
      %60 = vector.multi_reduction <add>, %59, %cst_25 [1] : vector<8x128xf32> to vector<8xf32>
      %61 = vector.shape_cast %60 : vector<8xf32> to vector<8x1xf32>
      %62 = tpu.reciprocal %61 {approx = true} : vector<8x1xf32> -> vector<8x1xf32>
      %63 = vector.broadcast %62 : vector<8x1xf32> to vector<8x128xf32>
      %64 = arith.mulf %59, %63 : vector<8x128xf32>
      %c0_26 = arith.constant 0 : index
      %c0_27 = arith.constant 0 : index
      %65 = vector.load %arg9[%c0_26, %c0_27] : memref<8x128xf32, #tpu.memory_space<vmem>>, vector<8x128xf32>
      tpu.vector_store %arg9[%c0_26, %c0_27], %64 {strides = array<i32>} : memref<8x128xf32, #tpu.memory_space<vmem>>, vector<8x128xf32>,
      %66 = tpu.transpose %51, [1, 0] : vector<8x128xf32> -> vector<128x8xf32>
      %cst_28 = arith.constant dense<0.000000e+00> : vector<128x32xf32>
      %67 = tpu.matmul %66, %29, %cst_28 {dimension_numbers = #tpu.dot_dimension_numbers<[1], [0], [0], [1], [0, 0, 1, 1], [], []>} : vector<128x8xf32>, vector<8x32xf32>, vector<128x32xf32> -> vector<128x32xf32>
      %c0_29 = arith.constant 0 : index
      %c0_30 = arith.constant 0 : index
      %68 = vector.load %arg10[%c0_29, %c0_30] : memref<128x32xf32, #tpu.memory_space<vmem>>, vector<128x32xf32>
      tpu.vector_store %arg10[%c0_29, %c0_30], %67 {strides = array<i32>} : memref<128x32xf32, #tpu.memory_space<vmem>>, vector<128x32xf32>,
      %cst_31 = arith.constant 0.000000e+00 : f32
      %69 = vector.broadcast %cst_31 : f32 to vector<96x32xf32>
      %c32 = arith.constant 32 : index
      %c0_32 = arith.constant 0 : index
      %70 = vector.load %arg11[%c32, %c0_32] : memref<128x32xf32, #tpu.memory_space<vmem>>, vector<96x32xf32>
      tpu.vector_store %arg11[%c32, %c0_32], %69 {strides = array<i32>} : memref<128x32xf32, #tpu.memory_space<vmem>>, vector<96x32xf32>,
    } else {
    }
    %c8_i32 = arith.constant 8 : i32
    %3 = arith.muli %arg1, %c8_i32 : i32
    %4 = tpu.assume_multiple %3, 8 : i32
    %5 = arith.index_cast %4 : i32 to index
    %c0 = arith.constant 0 : index
    %6 = vector.load %arg10[%5, %c0] : memref<128x32xf32, #tpu.memory_space<vmem>>, vector<8x32xf32>
    %c0_1 = arith.constant 0 : index
    %c0_2 = arith.constant 0 : index
    %c0_3 = arith.constant 0 : index
    %7 = vector.load %arg6[%c0_1, %c0_2, %c0_3] : memref<1x32x32xf32, #tpu.memory_space<vmem>>, vector<1x32x32xf32>
    %8 = vector.shape_cast %7 : vector<1x32x32xf32> to vector<32x32xf32>
    %cst = arith.constant dense<0.000000e+00> : vector<8x32xf32>
    %9 = tpu.matmul %6, %8, %cst {dimension_numbers = #tpu.dot_dimension_numbers<[1], [0], [0], [1], [0, 0, 1, 1], [], []>} : vector<8x32xf32>, vector<32x32xf32>, vector<8x32xf32> -> vector<8x32xf32>
    %c0_4 = arith.constant 0 : index
    %c0_5 = arith.constant 0 : index
    %c0_6 = arith.constant 0 : index
    %10 = vector.load %arg7[%c0_4, %c0_5, %c0_6] : memref<1x1x32xf32, #tpu.memory_space<vmem>>, vector<1x1x32xf32>
    %11 = vector.shape_cast %10 : vector<1x1x32xf32> to vector<1x32xf32>
    %12 = vector.broadcast %11 : vector<1x32xf32> to vector<8x32xf32>
    %13 = arith.addf %9, %12 : vector<8x32xf32>
    %14 = arith.index_cast %4 : i32 to index
    %c0_7 = arith.constant 0 : index
    %15 = vector.load %arg11[%14, %c0_7] : memref<128x32xf32, #tpu.memory_space<vmem>>, vector<8x32xf32>
    tpu.vector_store %arg11[%14, %c0_7], %13 {strides = array<i32>} : memref<128x32xf32, #tpu.memory_space<vmem>>, vector<8x32xf32>,
    %c3_i32 = arith.constant 3 : i32
    %16 = arith.cmpi eq, %arg1, %c3_i32 : i32
    %17 = arith.extui %16 : i1 to i32
    %c0_i32_8 = arith.constant 0 : i32
    %18 = arith.cmpi ne, %17, %c0_i32_8 : i32
    scf.if %18 {
      %c0_9 = arith.constant 0 : index
      %c0_10 = arith.constant 0 : index
      %19 = vector.load %arg9[%c0_9, %c0_10] : memref<8x128xf32, #tpu.memory_space<vmem>>, vector<8x128xf32>
      %c0_11 = arith.constant 0 : index
      %c0_12 = arith.constant 0 : index
      %20 = vector.load %arg11[%c0_11, %c0_12] : memref<128x32xf32, #tpu.memory_space<vmem>>, vector<128x32xf32>
      %cst_13 = arith.constant dense<0.000000e+00> : vector<8x32xf32>
      %21 = tpu.matmul %19, %20, %cst_13 {dimension_numbers = #tpu.dot_dimension_numbers<[1], [0], [0], [1], [0, 0, 1, 1], [], []>} : vector<8x128xf32>, vector<128x32xf32>, vector<8x32xf32> -> vector<8x32xf32>
      %c0_14 = arith.constant 0 : index
      %c0_15 = arith.constant 0 : index
      %c0_16 = arith.constant 0 : index
      %22 = vector.load %arg8[%c0_14, %c0_15, %c0_16] : memref<1x8x32xf32, #tpu.memory_space<vmem>>, vector<1x8x32xf32>
      %23 = vector.shape_cast %22 : vector<1x8x32xf32> to vector<8x32xf32>
      %24 = vector.shape_cast %21 : vector<8x32xf32> to vector<1x8x32xf32>
      tpu.vector_store %arg8[%c0_14, %c0_15, %c0_16], %24 {strides = array<i32>} : memref<1x8x32xf32, #tpu.memory_space<vmem>>, vector<1x8x32xf32>,
    } else {
    }
    return
  }
  func.func @transform_0(%arg0: i32, %arg1: i32) -> (i32, i32, i32) {
    %c0_i32 = arith.constant 0 : i32
    %c0_i32_0 = arith.constant 0 : i32
    %c0_i32_1 = arith.constant 0 : i32
    return %arg0, %c0_i32, %c0_i32_0 : i32, i32, i32
  }
  func.func @transform_1(%arg0: i32, %arg1: i32) -> (i32, i32) {
    %c0_i32 = arith.constant 0 : i32
    %c0_i32_0 = arith.constant 0 : i32
    %c0_i32_1 = arith.constant 0 : i32
    return %c0_i32, %c0_i32_0 : i32, i32
  }
  func.func @transform_2(%arg0: i32, %arg1: i32) -> (i32, i32) {
    %c0_i32 = arith.constant 0 : i32
    %c0_i32_0 = arith.constant 0 : i32
    %c0_i32_1 = arith.constant 0 : i32
    return %c0_i32, %c0_i32_0 : i32, i32
  }
  func.func @transform_3(%arg0: i32, %arg1: i32) -> i32 {
    %c0_i32 = arith.constant 0 : i32
    %c0_i32_0 = arith.constant 0 : i32
    return %c0_i32 : i32
  }
  func.func @transform_4(%arg0: i32, %arg1: i32) -> (i32, i32, i32) {
    %c0_i32 = arith.constant 0 : i32
    %c0_i32_0 = arith.constant 0 : i32
    %c0_i32_1 = arith.constant 0 : i32
    return %arg1, %c0_i32, %c0_i32_0 : i32, i32, i32
  }
  func.func @transform_5(%arg0: i32, %arg1: i32) -> (i32, i32, i32) {
    %c0_i32 = arith.constant 0 : i32
    %c0_i32_0 = arith.constant 0 : i32
    %c0_i32_1 = arith.constant 0 : i32
    return %arg1, %c0_i32, %c0_i32_0 : i32, i32, i32
  }
  func.func @transform_6(%arg0: i32, %arg1: i32) -> (i32, i32, i32) {
    %c0_i32 = arith.constant 0 : i32
    %c0_i32_0 = arith.constant 0 : i32
    %c0_i32_1 = arith.constant 0 : i32
    return %arg0, %c0_i32, %c0_i32_0 : i32, i32, i32
  }
}

</mosaic_0001>

<bundles_post_ra>
// kernel: tpu_custom_call.1
= control target key start
LH: loop header
LB: loop body
LE: loop exit
PB: predicated region body
PF: predicated region fallthrough
CT: control target
= control target key end

     0   :  { %s2018_s0 = inlined_call_operand.hbm [shape: f32[2,8,32], index: 0, kind: input, shape index: {}]   ;;  %s2019_s1 = inlined_call_operand.hbm [shape: f32[32,128], index: 1, kind: input, shape index: {}]   ;;  %s2020_s2 = inlined_call_operand.vmem [shape: f32[1,128], index: 2, kind: input, shape index: {}]   ;;  %s2021_s3 = inlined_call_operand.<no memory space> [shape: f32[1], index: 3, kind: input, shape index: {}]   ;;  %s2022_s4 = inlined_call_operand.hbm [shape: f32[4,32,32], index: 4, kind: input, shape index: {}]   ;;  %s2023_s5 = inlined_call_operand.vmem [shape: f32[4,1,32], index: 5, kind: input, shape index: {}]   ;;  %s2024_s6 = inlined_call_operand.hbm [shape: f32[2,8,32], index: 6, kind: output, shape index: {}]  }
   0x1   :  { %2034 = sst [smem:[#allocation25_spill]] %s2018_s0 }
   0x2   :  { %2035 = sst [smem:[#allocation26_spill]] %s2022_s4 }
   0x3   :  { %2036 = sst [smem:[#allocation27_spill]] %s2024_s6 }
   0x4   :  { %11 = sst [smem:[#allocation5]] %s2021_s3 }
   0x5   :  { %12 = vsyncpa [#allocation7], 0 }
   0x6   :  { %14 = vsyncpa [#allocation7 + $0x1], 0 }
   0x7   :  { %15 = vsyncpa [#allocation10], 0 }
   0x8   :  { %16 = vsyncpa [#allocation8], 0 }
   0x9   :  { %18 = vsyncpa [#allocation8 + $0x1], 0  ;;  %s1660_s23 = smov 0   ;;  %s1662_s24 = smov 0  }
   0xa   :  { %s1664_s25 = smov 0   ;;  %s1666_s26 = smov 0  }
   0xb   :  { %s1668_s27 = smov 0   ;;  %s1670_s28 = smov 0  }
   0xc   :  { %s1672_s29 = smov 0   ;;  %s1674_s3 = smov 0  }
   0xd   :  { %s1676_s30 = smov 0   ;;  %s1678_s7 = smov 0  }
   0xe   :  { %s1680_s8 = smov 0  }
   0xf LB: > { %2037 = sst [smem:[#allocation17_spill]] %s1588_s28  ;;  %s1716_s9 = sadd.s32 4294967295, %s1608_s8   ;;  %s1608_s8 = sphi %s1680_s8, %s24_s8   ;;  %s1604_s7 = sphi %s1678_s7, %s2070_s7   ;;  %s1600_s30 = sphi %s1676_s30, %s2069_s30   ;;  %s1596_s3 = sphi %s1674_s3, %s2068_s3   ;;  %s1592_s29 = sphi %s1672_s29, %s2067_s29   ;;  %s1588_s28 = sphi %s1670_s28, %s2066_s28   ;;  %s1584_s27 = sphi %s1668_s27, %s2075_s27   ;;  %s1580_s26 = sphi %s1666_s26, %s2074_s26   ;;  %s1576_s25 = sphi %s1664_s25, %s2073_s25   ;;  %s1572_s24 = sphi %s1662_s24, %s2072_s24   ;;  %s1568_s23 = sphi %s1660_s23, %s2071_s23  }
  0x10   : > { %2038 = sst [smem:[#allocation18_spill]] %s1600_s30  ;;  %s1085_s10 = sadd.s32 4294967294, %s1608_s8  }
  0x11   : > { %2039 = sst [smem:[#allocation19_spill]] %s1604_s7  ;;  %s33_s11 = sadd.s32 1, %s1600_s30 }
  0x12   : > { %s36_s12 = sadd.s32 1, %s1604_s7  ;;  %p34_p0 = scmp.ge.s32.totalorder %s33_s11, 4 }
  0x13   : > { %s43_s13 = sadd.s32 1, %s1588_s28  ;;  %p50_p1 = scmp.ne.s32.totalorder %s1588_s28, %s1584_s27 }
  0x14   : > { %p51_p2 = scmp.eq.s32.totalorder %s1608_s8, 0  ;;  %s2077_s11 = smov (%p34_p0, %s33_s11), 0 }
  0x15   : > { %2040 = sst [smem:[#allocation20_spill]] %s2077_s11  ;;  %s2079_s12 = smov (!%p34_p0, %s36_s12), %s1604_s7 }
  0x16   : > { %p1733_p3 = por %p51_p2, %p50_p1  ;;  %p2029_p4 = scmp.ne.s32.totalorder %s1584_s27, %s1580_s26 }
  0x17   : > { %p38_p5 = scmp.ge.s32.totalorder %s2079_s12, 2  ;;  %s129_s15 = ssub.s32 %s1600_s30, %s2077_s11 }
  0x18   : > { %p130_p6 = scmp.eq.s32.totalorder %s129_s15, 0  ;;  %s132_s16 = sadd.s32 1, %s1576_s25 }
  0x19   : > { %s2081_s12 = smov (%p38_p5, %s2079_s12), 0  ;;  %p139_p7 = scmp.ne.s32.totalorder %s1576_s25, %s1572_s24 }
  0x1a   : > { %2042 = sst [smem:[#allocation21_spill]] %s2081_s12  ;;  %s40_s18 = ssub.s32 %s1604_s7, %s2081_s12 }
  0x1b   : > { %s1745_s17 = scalar_select %p130_p6, %s1576_s25, %s132_s16  }
  0x1c   : > { %p41_p8 = scmp.eq.s32.totalorder %s40_s18, 0  ;;  %p1755_p10 = por %p139_p7, %p51_p2 }
  0x1d   : > { %2043 = sst [smem:[#allocation22_spill]] %s1745_s17  ;;  %p195_p11 = scmp.eq.s32.totalorder %s1716_s9, 7 }
  0x1e   : > { %s1761_s20 = scalar_select %p41_p8, %s1588_s28, %s43_s13  }
  0x1f   : > { %p1766_p12 = por %p195_p11, %p50_p1  ;;  %p201_p13 = scmp.eq.s32.totalorder %s1085_s10, 7 }
  0x20   : > { %2045 = sst [smem:[#allocation23_spill]] %s1761_s20  ;;  %p1282_p5 = scmp.lt.s32.totalorder %s1608_s8, 8 }
  0x21   : > { %p1773_p0 = por %p201_p13, %p2029_p4  ;;  %s240_s15 = sand.u32 1, %s1608_s8  }
  0x22   : > { %s242_s16 = sand.u32 1, %s1588_s28   ;;  %s1090_s12 = sshll.u32 %s1604_s7, 7 }
  0x23   : > { %s2047_s22 = scalar_select %p1773_p0, 1, 0 }
  0x24   : > { %s1089_s18 = sshll.u32 %s242_s16, 3  ;;  %s2049_s0 = sld [smem:[#allocation25_spill]] }
  0x25   : > { %2048 = sst [smem:[#allocation24_spill]] %s2047_s22  ;;  %s244_s20 = scalar_lea.vmem [#allocation6], %s1089_s18 }
  0x26   : > { %s251_s6 = sshll.u32 %s244_s20, 4  ;;  %p1786_p1 = pnand %p1282_p5, %p1733_p3  ;;  %s252_s6 = int_to_ptr.vmem [resolvable:$true] %s251_s6 }
  0x27   : > { %p1792_p2 = pnand %p1282_p5, %p1755_p10  ;;  %s1796_s16 = scalar_lea.sflag [#allocation7], %s240_s15 }
  0x28   : > { %p1400_p6 = pneg %p1786_p1  ;;  %s1411_s11 = scalar_lea.vmem %s252_s6, 128 }
  0x29   : > { %p1412_p7 = scmp.ne.s32.totalorder %s252_s6, %s1411_s11 }
  0x2a   : > { %s249_s13 = scalar_lea.hbm %s2049_s0, %s1090_s12  ;;  %s1610_s12 = smov [#allocation6]  }
  0x2b   : > { %p1414_p8 = pnand %p1412_p7, %p1400_p6  ;;  %s1416_s14 = sshll.u32 %s1610_s12, 4  ;;  %s1417_s14 = int_to_ptr.vmem [resolvable:$false] %s1416_s14 }
  0x2c   : > { %s1418_s17 = scalar_lea.vmem %s1417_s14, 256  ;;  %p1419_p3 = scmp.lt.s32.totalorder %s252_s6, %s1417_s14 }
  0x2d   : > { %p1415_p11 = pneg %p1414_p8  ;;  %p1420_p13 = scmp.lt.s32.totalorder %s1418_s17, %s1411_s11 }
  0x2f   : > { %p1421_p9 = por %p1420_p13, %p1419_p3 }
  0x31   : > { %p1422_p4 = pnand %p1421_p9, %p1415_p11 }
  0x33   : > { %1425 = shalt.err (!%p1422_p4)
}
  0x34   : > { %1273 = dma.hbm_to_vmem [thread:$0]  (!%p1786_p1), %s249_s13, 128, %s252_s6, %s1796_s16  }
  0x35   : > { %p2030_p10 = scmp.eq.s32.totalorder %s1716_s9, 0  ;;  %p1086_p5 = scmp.ge.s32.totalorder %s1608_s8, 1 }
  0x36   : > { %p208_p9 = scmp.lt.s32.totalorder %s1608_s8, 9  ;;  %p2052_p4 = scmp.ne.s32.totalorder %s1584_s27, %s1580_s26 }
  0x37   : > { %p2054_p7 = scmp.ne.s32.totalorder %s1572_s24, %s1568_s23  ;;  %s1611_s6 = smov [#allocation9]  }
  0x38   : > { %p1811_p6 = por %p2030_p10, %p2052_p4  ;;  %p1824_p11 = pnand %p1086_p5, %p208_p9 }
  0x39   : > { %p1820_p8 = por %p2054_p7, %p2030_p10  ;;  %s220_s18 = sshll.u32 %s1611_s6, 4  ;;  %s221_s18 = int_to_ptr.vmem [resolvable:$true] %s220_s18 }
  0x3a   : > { %p1266_p1 = pneg %p1824_p11  ;;  %s260_s13 = sand.u32 1, %s1576_s25  }
  0x3b   : > { %s1091_s23 = sshll.u32 %s260_s13, 5  ;;  %s1126_s11 = sshll.u32 %s1600_s30, 9 }
  0x3c   : > { %p1833_p3 = pnand %p1266_p1, %p2030_p10  ;;  %s2058_s4 = sld [smem:[#allocation26_spill]] }
  0x3d   : > { %s1437_s6 = scalar_lea.vmem %s221_s18, 512  ;;  %p1445_p7 = scmp.lt.s32.totalorder %s221_s18, %s221_s18 }
  0x3e   : > { %p1428_p13 = pneg %p1833_p3  ;;  %p1438_p5 = scmp.ne.s32.totalorder %s221_s18, %s1437_s6 }
  0x3f   : > { %p1446_p0 = scmp.lt.s32.totalorder %s1437_s6, %s1437_s6 }
  0x40   : > { %p1440_p9 = pnand %p1438_p5, %p1428_p13 }
  0x41   : > { %p1447_p1 = por %p1446_p0, %p1445_p7 }
  0x42   : > { %s1841_s17 = scalar_lea.hbm %s2058_s4, %s1126_s11  ;;  %p1441_p4 = pneg %p1440_p9 }
  0x44   : > { %p1448_p10 = pnand %p1447_p1, %p1441_p4 }
  0x46   : > { %1451 = shalt.err (!%p1448_p10)
}
  0x47   : > { %s1612_s0 = smov 128   ;;  %s1613_s13 = smov 8  }
  0x48   : > { %1269 = dma.hbm_to_vmem [thread:$0]  (!%p1833_p3), %s2019_s1, 512, %s221_s18, [#allocation10], %s1612_s0, %s1612_s0, %s1613_s13  }
  0x49   : > { %s262_s11 = scalar_lea.vmem [#allocation11], %s1091_s23  ;;  %p1454_p13 = pneg %p1792_p2 }
  0x4a   : > { %s269_s14 = sshll.u32 %s262_s11, 4  ;;  %s1614_s6 = smov [#allocation11]   ;;  %s270_s14 = int_to_ptr.vmem [resolvable:$true] %s269_s14 }
  0x4b   : > { %s1465_s4 = scalar_lea.vmem %s270_s14, 512  ;;  %s1470_s30 = sshll.u32 %s1614_s6, 4  ;;  %s1471_s30 = int_to_ptr.vmem [resolvable:$false] %s1470_s30 }
  0x4c   : > { %p1466_p5 = scmp.ne.s32.totalorder %s270_s14, %s1465_s4  ;;  %s1472_s28 = scalar_lea.vmem %s1471_s30, 1024 }
  0x4d   : > { %p1473_p10 = scmp.lt.s32.totalorder %s270_s14, %s1471_s30  ;;  %p1474_p4 = scmp.lt.s32.totalorder %s1472_s28, %s1465_s4 }
  0x4e   : > { %p1468_p9 = pnand %p1466_p5, %p1454_p13 }
  0x4f   : > { %p1475_p7 = por %p1474_p4, %p1473_p10 }
  0x50   : > { %p1469_p0 = pneg %p1468_p9 }
  0x52   : > { %p1476_p1 = pnand %p1475_p7, %p1469_p0 }
  0x54   : > { %1479 = shalt.err (!%p1476_p1)
}
  0x55   : > { %1276 = dma.hbm_to_vmem [thread:$0]  (!%p1792_p2), %s1841_s17, 512, %s270_s14, %s1796_s16, %s1612_s0, %s1612_s0, %s1613_s13  }
  0x56   : > { %287 = sbr.rel (%p1824_p11) target bundleno = 1378 (0x562), region = 44  ;;  %s289_s7 = sand.u32 (!%p1824_p11), 1, %s1716_s9  }
  0x57   : > { %s291_s18 = sand.u32 (!%p1824_p11), 1, %s1584_s27   ;;  %s290_s4 = scalar_lea.sflag (!%p1824_p11), [#allocation7], %s289_s7 }
  0x58   : > { %s1862_s30 = sshll.u32 (!%p1824_p11), %s291_s18, 3 }
  0x59   : > { %s293_s28 = scalar_lea.vmem (!%p1824_p11), [#allocation6], %s1862_s30 }
  0x5b   : > { %1551 = dma.done.wait (%p1811_p6), %s290_s4, 128  }
  0x5c   : > { %1553 = vsyncadd (%p1811_p6), %s290_s4, 4294967168  ;;  %p2059_p2 = scmp.eq.s32.totalorder %s1716_s9, 0 }
  0x5e   : > { %1555 = dma.done.wait (%p2059_p2), [#allocation10], 512   ;;  %p2060_p11 = pmov %p2059_p2 }
  0x5f   : > { %s304_s0 = sand.u32 1, %s1572_s24  }
  0x60   : > { %1557 = vsyncadd (%p2060_p11), [#allocation10], 4294966784  ;;  %s1097_s22 = sshll.u32 %s304_s0, 5 }
  0x61   : > { %s1874_s16 = scalar_lea.vmem [#allocation11], %s1097_s22 }
  0x62   : > { %1559 = dma.done.wait (%p1820_p8), %s290_s4, 512  }
  0x63   : > { %1561 = vsyncadd (%p1820_p8), %s290_s4, 4294966784  ;;  %p343_p6 = scmp.lt.s32.totalorder %s1592_s29, 3  ;;  %s342_s23 = scalar_lea.vmem [#allocation12], %s1862_s30 }
  0x64   : > { %p1099_p3 = scmp.ne.s32.totalorder %s1592_s29, 0 }
  0x65   : > { %s1882_s19 = scalar_select %p343_p6, %s1592_s29, 3 }
  0x66   : > { %349 = sbr.rel (%p1099_p3) target bundleno = 917 (0x395), region = 60  ;;  %s390_s20 = sld [smem:[#allocation5]] (!%p1099_p3) }
  0x67   : > { %s345_s10 = scalar_lea.vmem %s2023_s5, %s1882_s19 }
  0x6b   : > { %v1890_v0 = vld [vmem:[%s293_s28] sm:$0xff]  ;;  %vm356_vm0 = vcmask 261120   ;;  %v351_v1 = vld [vmem:[#allocation9] sm:$0xff]  ;;  %v352_v2 = vld [vmem:[#allocation9 + $0x8] sm:$0xff]  ;;  %v1615_v22 = vmov 0.0   ;;  %vm1616_vm3 = vmmov 0  }
  0x6c   : > { %v355_v3 = vmul.f32 %v1890_v0, %v1890_v0  ;;  %v353_v4 = vld [vmem:[#allocation9 + $0x10] sm:$0xff]  ;;  %v354_v5 = vld [vmem:[#allocation9 + $0x18] sm:$0xff]  ;;  %v370_v6 = vmul.f32 %v351_v1, %v351_v1  ;;  %v371_v7 = vmul.f32 %v352_v2, %v352_v2  ;;  %1171 = vmatprep.subr.mxu0 %v1615_v22  ;;  %752 = vst.msk [vmem:[#allocation4 + $0x20] sm:$0xff] %vm356_vm0, %v1615_v22  ;;  %753 = vst.msk [vmem:[#allocation4 + $0x28] sm:$0xff] %vm356_vm0, %v1615_v22  ;;  %vm542_vm6 = vcmask 64512  }
  0x6d   : > { %v372_v8 = vmul.f32 %v353_v4, %v353_v4  ;;  %v373_v10 = vmul.f32 %v354_v5, %v354_v5  ;;  %754 = vst.msk [vmem:[#allocation4 + $0x30] sm:$0xff] %vm356_vm0, %v1615_v22  ;;  %755 = vst.msk [vmem:[#allocation4 + $0x38] sm:$0xff] %vm356_vm0, %v1615_v22  ;;  %1179 = vmatprep.mubr.msk.f32.mxu0 %vm1616_vm3, %v1615_v22  ;;  %v397_v28 = vstv %s390_s20  ;;  %v1101_v46 = vld [vmem:[%s2020_s2] ss:$0 sm:$0xff] }
  0x6e   : > { %v357_v9 = vsel %vm356_vm0, %v355_v3, 0.0  ;;  %v374_v11 = vadd.f32 %v371_v7, %v370_v6  ;;  %756 = vst.msk [vmem:[#allocation4 + $0x40] sm:$0xff] %vm356_vm0, %v1615_v22  ;;  %757 = vst.msk [vmem:[#allocation4 + $0x48] sm:$0xff] %vm356_vm0, %v1615_v22 }
  0x6f   : > { %358 = vadd.xlane.f32.xlu0 %v357_v9  ;;  %758 = vst.msk [vmem:[#allocation4 + $0x50] sm:$0xff] %vm356_vm0, %v1615_v22  ;;  %759 = vst.msk [vmem:[#allocation4 + $0x58] sm:$0xff] %vm356_vm0, %v1615_v22 }
  0x70   : > { %v375_v12 = vadd.f32 %v374_v11, %v372_v8  ;;  %760 = vst.msk [vmem:[#allocation4 + $0x60] sm:$0xff] %vm356_vm0, %v1615_v22  ;;  %761 = vst.msk [vmem:[#allocation4 + $0x68] sm:$0xff] %vm356_vm0, %v1615_v22 }
  0x71   : > { %762 = vst.msk [vmem:[#allocation4 + $0x70] sm:$0xff] %vm356_vm0, %v1615_v22  ;;  %763 = vst.msk [vmem:[#allocation4 + $0x78] sm:$0xff] %vm356_vm0, %v1615_v22 }
  0x72   : > { %v376_v13 = vadd.f32 %v375_v12, %v373_v10 }
  0x74   : > { %v377_v14 = vrot.slane %v376_v13, 4 }
  0x76   : > { %v378_v15 = vadd.f32 %v377_v14, %v376_v13 }
  0x78   : > { %v379_v16 = vrot.slane %v378_v15, 2 }
  0x7a   : > { %v380_v17 = vadd.f32 %v379_v16, %v378_v15 }
  0x7c   : > { %v381_v18 = vrot.slane %v380_v17, 1 }
  0x7e   : > { %v382_v19 = vadd.f32 %v381_v18, %v380_v17 }
  0x80   : > { %1382 = vrsqrt.f32 %v382_v19  ;;  %vm385_vm1 = vcmp.eq.f32.partialorder %v382_v19, inf  ;;  %v388_v21 = vand.u32 2147483648, %v382_v19  ;;  %vm387_vm2 = vcmp.eq.f32.partialorder %v382_v19, 0.0 }
  0x8d   : > { %v1383_v20 = vpop.eup %1382 }
  0x8e   : > { %v384_v23 = vmul.f32 %v1383_v20, %v382_v19 }
  0x90   : > { %v386_v24 = vsel %vm385_vm1, %v382_v19, %v384_v23 }
  0x91   : > { %v389_v25 = vsel %vm387_vm2, %v388_v21, %v386_v24 }
  0x92   : > { %v391_v26 = vmax.f32 %v389_v25, 1e-12 }
  0x94   : > { %1384 = vrcp.f32 %v391_v26 }
  0xa1   : > { %v1385_v27 = vpop.eup %1384 }
  0xa2   : > { %v396_v29 = vmul.f32 %v1385_v27, %v354_v5  ;;  %v395_v30 = vmul.f32 %v1385_v27, %v353_v4  ;;  %v394_v31 = vmul.f32 %v1385_v27, %v352_v2  ;;  %v393_v34 = vmul.f32 %v1385_v27, %v351_v1 }
  0xa4   : > { %v401_v32 = vmul.f32 %v397_v28, %v396_v29  ;;  %v400_v33 = vmul.f32 %v397_v28, %v395_v30  ;;  %v399_v35 = vmul.f32 %v397_v28, %v394_v31  ;;  %v398_v36 = vmul.f32 %v397_v28, %v393_v34 }
  0xa6   : > { %1172 = vmatpush3.msra.mxu0 %v401_v32 }
  0xa7   : > { %1173 = vmatprep.subr.mxu0 %v1615_v22 }
  0xa8   : > { %1174 = vmatpush3.msra.mxu0 %v400_v33 }
  0xa9   : > { %1175 = vmatprep.subr.mxu0 %v1615_v22 }
  0xaa   : > { %1176 = vmatpush3.msra.mxu0 %v399_v35 }
  0xab   : > { %1177 = vmatprep.subr.mxu0 %v1615_v22 }
  0xac   : > { %1178 = vmatpush3.msra.mxu0 %v398_v36 }
  0xf8   : > { %v359_v37 = vpop.xlane.xlu0 %358 }
  0xf9   : > { %1386 = vrsqrt.f32 %v359_v37  ;;  %vm362_vm4 = vcmp.eq.f32.partialorder %v359_v37, inf  ;;  %v365_v40 = vand.u32 2147483648, %v359_v37  ;;  %vm364_vm5 = vcmp.eq.f32.partialorder %v359_v37, 0.0 }
 0x106   : > { %v1387_v38 = vpop.eup %1386 }
 0x107   : > { %v361_v39 = vmul.f32 %v1387_v38, %v359_v37 }
 0x109   : > { %v363_v41 = vsel %vm362_vm4, %v359_v37, %v361_v39 }
 0x10a   : > { %v366_v42 = vsel %vm364_vm5, %v365_v40, %v363_v41 }
 0x10b   : > { %v367_v43 = vmax.f32 %v366_v42, 1e-12 }
 0x10d   : > { %1388 = vrcp.f32 %v367_v43 }
 0x11a   : > { %v1389_v44 = vpop.eup %1388 }
 0x11b   : > { %v369_v45 = vmul.f32 %v1389_v44, %v1890_v0 }
 0x11d   : > { %1180 = vmatmul.mubr.msk.f32.vlgmr.msra.gmra.mxu0 %vm356_vm0, %v369_v45  ;;  %1182 = vmatprep.subr.mxu0 %v369_v45 }
 0x11e   : > { %1254 = vmatprep.subr.mxu1 %v369_v45  ;;  %1183 = vmatpush3.msra.mxu0 %v369_v45 }
 0x11f   : > { %1255 = vmatpush3.msra.mxu1 %v369_v45 }
 0x1dd   : > { %v471_v47 = vpop.f32.mrf.mxu0 }
 0x1de   : > { %v475_v48 = vrot.slane %v471_v47, 4  ;;  %v499_v49 = vadd.f32 %v1101_v46, %v471_v47 }
 0x1df   : > { %v1181_v50 = vpop.f32.mrf.mxu0 }
 0x1e0   : > { %v476_v51 = vmax.f32 %v471_v47, %v475_v48  ;;  %500 = vmax.xlane.f32.xlu1 %v499_v49 }
 0x1e2   : > { %v477_v52 = vrot.slane %v476_v51, 2 }
 0x1e4   : > { %v478_v53 = vmax.f32 %v476_v51, %v477_v52 }
 0x1e6   : > { %v479_v54 = vrot.slane %v478_v53, 1 }
 0x1e8   : > { %v480_v55 = vmax.f32 %v478_v53, %v479_v54 }
 0x1ea   : > { %v481_v56 = vsub.f32 %v471_v47, %v480_v55 }
 0x1ec   : > { %v482_v57 = vmul.f32 1.442695, %v481_v56 }
 0x1ee   : > { %1390 = vpow2.f32 %v482_v57 }
 0x1fb   : > { %v1391_v58 = vpop.eup %1390 }
 0x1fc   : > { %v484_v59 = vrot.slane %v1391_v58, 4 }
 0x1fe   : > { %v485_v60 = vadd.f32 %v1391_v58, %v484_v59 }
 0x200   : > { %v486_v61 = vrot.slane %v485_v60, 2 }
 0x202   : > { %v487_v62 = vadd.f32 %v486_v61, %v485_v60 }
 0x204   : > { %v488_v63 = vrot.slane %v487_v62, 1 }
 0x206   : > { %v489_v0 = vadd.f32 %v488_v63, %v487_v62 }
 0x208   : > { %1392 = vrcp.f32 %v489_v0 }
 0x215   : > { %v1393_v1 = vpop.eup %1392 }
 0x216   : > { %v491_v2 = vmul.f32 %v1393_v1, %v1391_v58 }
 0x218   : > { %510 = vxpose.xlu0.b32.start.end [1/1] (short) %v491_v2, 128 }
 0x269   : > { %v501_v3 = vpop.xlane.xlu1 %500 }
 0x26a   : > { %v502_v4 = vsub.f32 %v499_v49, %v501_v3 }
 0x26c   : > { %v503_v5 = vmul.f32 1.442695, %v502_v4 }
 0x26e   : > { %1394 = vpow2.f32 %v503_v5 }
 0x27b   : > { %v1395_v6 = vpop.eup %1394 }
 0x27c   : > { %505 = vadd.xlane.f32.xlu1 %v1395_v6 }
 0x294   : > { %v526_v7 = vpop.trf.xlu0 }
 0x295   : > { %1184 = vmatprep.mubr.msk.f32.mxu0 %vm542_vm6, %v526_v7 }
 0x298   : > { %v527_v8 = vpop.trf.xlu0 }
 0x299   : > { %1185 = vmatmul.mubr.msk.f32.vlgmr.msra.gmra.mxu0 %vm542_vm6, %v527_v8 }
 0x29c   : > { %v528_v9 = vpop.trf.xlu0 }
 0x29d   : > { %1187 = vmatprep.mubr.msk.f32.mxu0 %vm542_vm6, %v528_v9 }
 0x2a0   : > { %v529_v10 = vpop.trf.xlu0 }
 0x2a1   : > { %1188 = vmatmul.mubr.msk.f32.gmra.mxu0 %vm542_vm6, %v529_v10 }
 0x2a4   : > { %v530_v11 = vpop.trf.xlu0 }
 0x2a5   : > { %1190 = vmatprep.mubr.msk.f32.mxu1 %vm542_vm6, %v530_v11 }
 0x2a8   : > { %v531_v12 = vpop.trf.xlu0 }
 0x2a9   : > { %1191 = vmatmul.mubr.msk.f32.vlgmr.msra.gmra.mxu1 %vm542_vm6, %v531_v12 }
 0x2ac   : > { %v532_v13 = vpop.trf.xlu0 }
 0x2ad   : > { %1193 = vmatprep.mubr.msk.f32.mxu1 %vm542_vm6, %v532_v13 }
 0x2b0   : > { %v533_v14 = vpop.trf.xlu0 }
 0x2b1   : > { %1194 = vmatmul.mubr.msk.f32.gmra.mxu1 %vm542_vm6, %v533_v14 }
 0x2b4   : > { %v534_v15 = vpop.trf.xlu0 }
 0x2b5   : > { %1196 = vmatprep.mubr.msk.f32.mxu1 %vm542_vm6, %v534_v15 }
 0x2b8   : > { %v535_v16 = vpop.trf.xlu0 }
 0x2b9   : > { %1197 = vmatmul.mubr.msk.f32.gmra.mxu1 %vm542_vm6, %v535_v16 }
 0x2bc   : > { %v536_v17 = vpop.trf.xlu0 }
 0x2bd   : > { %1199 = vmatprep.mubr.msk.f32.mxu1 %vm542_vm6, %v536_v17 }
 0x2c0   : > { %v537_v18 = vpop.trf.xlu0 }
 0x2c1   : > { %1200 = vmatmul.mubr.msk.f32.gmra.mxu1 %vm542_vm6, %v537_v18 }
 0x2c4   : > { %v538_v19 = vpop.trf.xlu0 }
 0x2c5   : > { %1202 = vmatprep.mubr.msk.f32.mxu1 %vm542_vm6, %v538_v19 }
 0x2c8   : > { %v539_v20 = vpop.trf.xlu0 }
 0x2c9   : > { %1203 = vmatmul.mubr.msk.f32.gmra.mxu1 %vm542_vm6, %v539_v20 }
 0x2cc   : > { %v540_v21 = vpop.trf.xlu0 }
 0x2cd   : > { %1205 = vmatprep.mubr.msk.f32.mxu1 %vm542_vm6, %v540_v21 }
 0x2d0   : > { %v541_v22 = vpop.trf.xlu0 }
 0x2d1   : > { %1206 = vmatmul.mubr.msk.f32.gmra.mxu1 %vm542_vm6, %v541_v22 }
 0x305   : > { %v506_v23 = vpop.xlane.xlu1 %505 }
 0x306   : > { %1396 = vrcp.f32 %v506_v23 }
 0x313   : > { %v1397_v24 = vpop.eup %1396 }
 0x314   : > { %v508_v25 = vmul.f32 %v1397_v24, %v1395_v6 }
 0x316   : > { %509 = vst [vmem:[#allocation2] sm:$0xff] %v508_v25 }
 0x359   : > { %v1186_v26 = vpop.f32.mrf.mxu0 }
 0x35a   : > { %737 = vst.msk [vmem:[#allocation3 + $0x8] sm:$0xff] %vm356_vm0, %v1186_v26 }
 0x35b   : > { %v657_v27 = vpop.f32.mrf.mxu0 }
 0x35c   : > { %736 = vst.msk [vmem:[#allocation3] sm:$0xff] %vm356_vm0, %v657_v27 }
 0x361   : > { %v1189_v28 = vpop.f32.mrf.mxu0 }
 0x362   : > { %739 = vst.msk [vmem:[#allocation3 + $0x18] sm:$0xff] %vm356_vm0, %v1189_v28 }
 0x363   : > { %v667_v29 = vpop.f32.mrf.mxu0 }
 0x364   : > { %738 = vst.msk [vmem:[#allocation3 + $0x10] sm:$0xff] %vm356_vm0, %v667_v29 }
 0x369   : > { %v1192_v30 = vpop.f32.mrf.mxu1 }
 0x36a   : > { %741 = vst.msk [vmem:[#allocation3 + $0x28] sm:$0xff] %vm356_vm0, %v1192_v30 }
 0x36b   : > { %v677_v31 = vpop.f32.mrf.mxu1 }
 0x36c   : > { %740 = vst.msk [vmem:[#allocation3 + $0x20] sm:$0xff] %vm356_vm0, %v677_v31 }
 0x371   : > { %v1195_v32 = vpop.f32.mrf.mxu1 }
 0x372   : > { %743 = vst.msk [vmem:[#allocation3 + $0x38] sm:$0xff] %vm356_vm0, %v1195_v32 }
 0x373   : > { %v687_v33 = vpop.f32.mrf.mxu1 }
 0x374   : > { %742 = vst.msk [vmem:[#allocation3 + $0x30] sm:$0xff] %vm356_vm0, %v687_v33 }
 0x379   : > { %v1198_v34 = vpop.f32.mrf.mxu1 }
 0x37a   : > { %745 = vst.msk [vmem:[#allocation3 + $0x48] sm:$0xff] %vm356_vm0, %v1198_v34 }
 0x37b   : > { %v697_v35 = vpop.f32.mrf.mxu1 }
 0x37c   : > { %744 = vst.msk [vmem:[#allocation3 + $0x40] sm:$0xff] %vm356_vm0, %v697_v35 }
 0x381   : > { %v1201_v36 = vpop.f32.mrf.mxu1 }
 0x382   : > { %747 = vst.msk [vmem:[#allocation3 + $0x58] sm:$0xff] %vm356_vm0, %v1201_v36 }
 0x383   : > { %v707_v37 = vpop.f32.mrf.mxu1 }
 0x384   : > { %746 = vst.msk [vmem:[#allocation3 + $0x50] sm:$0xff] %vm356_vm0, %v707_v37 }
 0x389   : > { %v1204_v38 = vpop.f32.mrf.mxu1 }
 0x38a   : > { %749 = vst.msk [vmem:[#allocation3 + $0x68] sm:$0xff] %vm356_vm0, %v1204_v38 }
 0x38b   : > { %v717_v39 = vpop.f32.mrf.mxu1 }
 0x38c   : > { %748 = vst.msk [vmem:[#allocation3 + $0x60] sm:$0xff] %vm356_vm0, %v717_v39 }
 0x391   : > { %v1207_v40 = vpop.f32.mrf.mxu1 }
 0x392   : > { %751 = vst.msk [vmem:[#allocation3 + $0x78] sm:$0xff] %vm356_vm0, %v1207_v40 }
 0x393   : > { %v727_v41 = vpop.f32.mrf.mxu1 }
 0x394   : > { %750 = vst.msk [vmem:[#allocation3 + $0x70] sm:$0xff] %vm356_vm0, %v727_v41 }
 0x395 PF: > { %v770_v42 = vld [vmem:[%s1874_s16 + $0x18] sm:$0xff]  ;;  %s1118_s12 = sshll.u32 %s1592_s29, 3  ;;  %v1617_v43 = vmov 0.0   ;;  %v769_v44 = vld [vmem:[%s1874_s16 + $0x10] sm:$0xff]  ;;  %vm1618_vm7 = vmmov 0   ;;  %v768_v45 = vld [vmem:[%s1874_s16 + $0x8] sm:$0xff] }
 0x396   : > { %1208 = vmatprep.subr.mxu0 %v1617_v43  ;;  %1216 = vmatprep.mubr.msk.f32.mxu0 %vm1618_vm7, %v1617_v43  ;;  %v767_v46 = vld [vmem:[%s1874_s16] sm:$0xff]  ;;  %s765_s11 = scalar_lea.vmem [#allocation3], %s1118_s12  ;;  %vm778_vm8 = vcmask 261120   ;;  %v1119_v48 = vld [vmem:[%s345_s10] ss:$0 sm:$0xff]  ;;  %s852_s7 = scalar_lea.vmem [#allocation4], %s1118_s12 }
 0x397   : > { %1209 = vmatpush3.msra.mxu0 %v770_v42  ;;  %p1121_p8 = scmp.ne.s32.totalorder %s1592_s29, 3 }
 0x398   : > { %1210 = vmatprep.subr.mxu0 %v1617_v43 }
 0x399   : > { %1211 = vmatpush3.msra.mxu0 %v769_v44 }
 0x39a   : > { %1212 = vmatprep.subr.mxu0 %v1617_v43 }
 0x39b   : > { %1213 = vmatpush3.msra.mxu0 %v768_v45  ;;  %v766_v47 = vld [vmem:[%s765_s11] sm:$0xff] }
 0x39c   : > { %1214 = vmatprep.subr.mxu0 %v1617_v43 }
 0x39d   : > { %1215 = vmatpush3.msra.mxu0 %v767_v46 }
 0x39e   : > { %1217 = vmatmul.mubr.msk.f32.vlgmr.msra.gmra.mxu0 %vm778_vm8, %v766_v47 }
 0x45d   : > { %857 = sbr.rel (%p1121_p8) target bundleno = 1355 (0x54b), region = 64 }
 0x45e   : > { %v848_v49 = vpop.f32.mrf.mxu0 }
 0x45f   : > { %v849_v50 = vadd.f32 %v1119_v48, %v848_v49 }
 0x460   : > { %v1218_v51 = vpop.f32.mrf.mxu0 }
 0x461   : > { %853 = vst.msk [vmem:[%s852_s7] sm:$0xff] %vm778_vm8, %v849_v50 }
 0x462   : > { %v1619_v53 = vmov 0.0   ;;  %vm1620_vm9 = vmmov 0   ;;  %v858_v5 = vld [vmem:[#allocation2] sm:$0xff] }
 0x463   : > { %1219 = vmatprep.subr.mxu0 %v1619_v53  ;;  %1251 = vmatprep.mubr.msk.f32.mxu0 %vm1620_vm9, %v1619_v53 }
 0x468   : > { %v874_v52 = vld [vmem:[#allocation4 + $0x78] sm:$0xff]  ;;  %v873_v54 = vld [vmem:[#allocation4 + $0x70] sm:$0xff]  ;;  %v872_v55 = vld [vmem:[#allocation4 + $0x68] sm:$0xff] }
 0x469   : > { %1220 = vmatpush3.msra.mxu0 %v874_v52  ;;  %v871_v56 = vld [vmem:[#allocation4 + $0x60] sm:$0xff]  ;;  %v870_v57 = vld [vmem:[#allocation4 + $0x58] sm:$0xff]  ;;  %v869_v58 = vld [vmem:[#allocation4 + $0x50] sm:$0xff] }
 0x46a   : > { %1221 = vmatprep.subr.mxu0 %v1619_v53  ;;  %v868_v59 = vld [vmem:[#allocation4 + $0x48] sm:$0xff]  ;;  %v867_v60 = vld [vmem:[#allocation4 + $0x40] sm:$0xff]  ;;  %v866_v61 = vld [vmem:[#allocation4 + $0x38] sm:$0xff] }
 0x46b   : > { %1222 = vmatpush3.msra.mxu0 %v873_v54  ;;  %v865_v62 = vld [vmem:[#allocation4 + $0x30] sm:$0xff]  ;;  %v864_v63 = vld [vmem:[#allocation4 + $0x28] sm:$0xff]  ;;  %v863_v0 = vld [vmem:[#allocation4 + $0x20] sm:$0xff] }
 0x46c   : > { %1223 = vmatprep.subr.mxu0 %v1619_v53  ;;  %v862_v1 = vld [vmem:[#allocation4 + $0x18] sm:$0xff]  ;;  %v861_v2 = vld [vmem:[#allocation4 + $0x10] sm:$0xff]  ;;  %v860_v3 = vld [vmem:[#allocation4 + $0x8] sm:$0xff] }
 0x46d   : > { %1224 = vmatpush3.msra.mxu0 %v872_v55  ;;  %v859_v4 = vld [vmem:[#allocation4] sm:$0xff] }
 0x46e   : > { %1225 = vmatprep.subr.mxu0 %v1619_v53 }
 0x46f   : > { %1226 = vmatpush3.msra.mxu0 %v871_v56 }
 0x470   : > { %1227 = vmatprep.subr.mxu0 %v1619_v53 }
 0x471   : > { %1228 = vmatpush3.msra.mxu0 %v870_v57 }
 0x472   : > { %1229 = vmatprep.subr.mxu0 %v1619_v53 }
 0x473   : > { %1230 = vmatpush3.msra.mxu0 %v869_v58 }
 0x474   : > { %1231 = vmatprep.subr.mxu0 %v1619_v53 }
 0x475   : > { %1232 = vmatpush3.msra.mxu0 %v868_v59 }
 0x476   : > { %1233 = vmatprep.subr.mxu0 %v1619_v53 }
 0x477   : > { %1234 = vmatpush3.msra.mxu0 %v867_v60 }
 0x478   : > { %1235 = vmatprep.subr.mxu0 %v1619_v53 }
 0x479   : > { %1236 = vmatpush3.msra.mxu0 %v866_v61 }
 0x47a   : > { %1237 = vmatprep.subr.mxu0 %v1619_v53 }
 0x47b   : > { %1238 = vmatpush3.msra.mxu0 %v865_v62 }
 0x47c   : > { %1239 = vmatprep.subr.mxu0 %v1619_v53 }
 0x47d   : > { %1240 = vmatpush3.msra.mxu0 %v864_v63 }
 0x47e   : > { %1241 = vmatprep.subr.mxu0 %v1619_v53 }
 0x47f   : > { %1242 = vmatpush3.msra.mxu0 %v863_v0 }
 0x480   : > { %1243 = vmatprep.subr.mxu0 %v1619_v53 }
 0x481   : > { %1244 = vmatpush3.msra.mxu0 %v862_v1 }
 0x482   : > { %1245 = vmatprep.subr.mxu0 %v1619_v53 }
 0x483   : > { %1246 = vmatpush3.msra.mxu0 %v861_v2 }
 0x484   : > { %1247 = vmatprep.subr.mxu0 %v1619_v53 }
 0x485   : > { %1248 = vmatpush3.msra.mxu0 %v860_v3 }
 0x486   : > { %1249 = vmatprep.subr.mxu0 %v1619_v53 }
 0x487   : > { %1250 = vmatpush3.msra.mxu0 %v859_v4 }
 0x488   : > { %1252 = vmatmul.mubr.f32.vlgmr.msra.gmra.mxu0 %v858_v5 }
 0x548   : > { %v941_v6 = vpop.f32.mrf.mxu0 }
 0x549   : > { %945 = vst.msk [vmem:[%s342_s23] sm:$0xff] %vm778_vm8, %v941_v6 }
 0x54a   : > { %v1253_v7 = vpop.f32.mrf.mxu0 }
 0x54b PF: > { %s1123_s29 = sshll.u32 %s1596_s3, 7  ;;  %s2061_s0 = sld [smem:[#allocation27_spill]] }
 0x54c   : > { %s960_s16 = sshll.u32 %s342_s23, 4  ;;  %s947_s19 = scalar_lea.sflag [#allocation8], %s291_s18  ;;  %s961_s16 = int_to_ptr.vmem [resolvable:$true] %s960_s16 }
 0x54d   : > { %s1480_s9 = scalar_lea.vmem %s961_s16, 128  ;;  %s1621_s15 = smov [#allocation12]  }
 0x54e   : > { %p1481_p13 = scmp.ne.s32.totalorder %s961_s16, %s1480_s9  ;;  %s1484_s10 = sshll.u32 %s1621_s15, 4  ;;  %s1485_s10 = int_to_ptr.vmem [resolvable:$false] %s1484_s10 }
 0x54f   : > { %s1486_s20 = scalar_lea.vmem %s1485_s10, 256  ;;  %p1487_p0 = scmp.lt.s32.totalorder %s961_s16, %s1485_s10 }
 0x550   : > { %p1482_p5 = pnand %p1481_p13, %p1766_p12  ;;  %p1488_p10 = scmp.lt.s32.totalorder %s1486_s20, %s1480_s9 }
 0x551   : > { %s958_s22 = scalar_lea.hbm %s2061_s0, %s1123_s29 }
 0x552   : > { %p1483_p9 = pneg %p1482_p5  ;;  %p1489_p4 = por %p1488_p10, %p1487_p0 }
 0x554   : > { %p1490_p7 = pnand %p1489_p4, %p1483_p9 }
 0x556   : > { %1493 = shalt.err (!%p1490_p7)
}
 0x557   : > { %s1494_s3 = scalar_lea.hbm %s958_s22, 128  ;;  %s1498_s23 = scalar_lea.hbm %s2061_s0, 256 }
 0x558   : > { %p1495_p1 = scmp.ne.s32.totalorder %s958_s22, %s1494_s3  ;;  %p1499_p6 = scmp.lt.s32.totalorder %s958_s22, %s2061_s0 }
 0x559   : > { %p1500_p3 = scmp.lt.s32.totalorder %s1498_s23, %s1494_s3 }
 0x55a   : > { %p1496_p2 = pnand %p1495_p1, %p1766_p12 }
 0x55b   : > { %p1501_p8 = por %p1500_p3, %p1499_p6 }
 0x55c   : > { %p1497_p11 = pneg %p1496_p2 }
 0x55e   : > { %p1502_p13 = pnand %p1501_p8, %p1497_p11 }
 0x560   : > { %1505 = shalt.err (!%p1502_p13)
}
 0x561   : > { %1264 = dma.vmem_to_hbm [thread:$0]  (%p1766_p12), %s961_s16, 128, %s958_s22, %s947_s19  }
 0x562 PF: > { %s2062_s12 = sld [smem:[#allocation24_spill]]  ;;  %p1284_p5 = scmp.ge.s32.totalorder %s1608_s8, 2 }
 0x563   : > { %s972_s11 = sand.u32 1, %s1580_s26  }
 0x564   : > { %s973_s14 = scalar_lea.sflag [#allocation8], %s972_s11 }
 0x568   : > { %p2063_p9 = scmp.ne.s32.totalorder %s2062_s12, 0 }
 0x56a   : > { %p1278_p0 = pnand %p1284_p5, %p2063_p9 }
 0x56c   : > { %p1279_p10 = pneg %p1278_p0 }
 0x56e   : > { %1563 = dma.done.wait (%p1279_p10), %s973_s14, 128  }
 0x56f   : > { %1565 = vsyncadd (%p1279_p10), %s973_s14, 4294967168  ;;  %s24_s8 = sadd.s32 1, %s1608_s8   ;;  %s2064_s6 = sld [smem:[#allocation22_spill]] }
 0x570   : > { %p21_p4 = scmp.ge.s32.totalorder %s24_s8, 10   ;;  %s2065_s21 = sld [smem:[#allocation17_spill]] }
 0x571   : > { %s2066_s28 = sld [smem:[#allocation23_spill]]  ;;  %s2071_s23 = smov %s1572_s24 }
 0x572   : > { %s2067_s29 = sld [smem:[#allocation18_spill]]  ;;  %s2072_s24 = smov %s1576_s25 }
 0x573   : > { %s2068_s3 = sld [smem:[#allocation19_spill]]  ;;  %s2074_s26 = smov %s1584_s27 }
 0x574   : > { %s2069_s30 = sld [smem:[#allocation20_spill]]  ;;  %23 = sbr.rel (!%p21_p4) target bundleno = 15 (0xf), region = 117 }
 0x575   : > { %s2070_s7 = sld [smem:[#allocation21_spill]]  ;;  %s2073_s25 = smov %s2064_s6 }
 0x576   : > { %s2075_s27 = smov %s2065_s21 }
 0x579   :  { %978 = vsyncpa [#allocation7], 1 }
 0x57a   :  { %980 = vsyncpa [#allocation7 + $0x1], 1 }
 0x57b   :  { %981 = vsyncpa [#allocation10], 1 }
 0x57c   :  { %982 = vsyncpa [#allocation8], 1 }
 0x57d   :  { %984 = vsyncpa [#allocation8 + $0x1], 1 }

</bundles_post_ra>
